<compile_context>
chip_gen: v5e
topology: v5e:2x2
jax: 0.10.0
libtpu: 0.0.40
codegen_flags: <defaults>
</compile_context>

<pallas_src>
import functools
import math

import jax
import jax.numpy as jnp
from jax.experimental import pallas as pl
from jax.experimental.pallas import tpu as pltpu


def _round_up(x, m):
    return ((x + m - 1) // m) * m


def _pick_tn(hp):
    # Largest column tile that divides Hp; >= 512 keeps v5e's 4x128^2 MXUs fed.
    for tn in (512, 256, 128):
        if hp % tn == 0:
            return tn
    return hp


def taugru_kernel(hx_ref, hxd_ref, w_cur_ref, w_del_ref, h_ref, out_ref, *,
                  dt, alpha, beta):
    hx = hx_ref[...]
    hxd = hxd_ref[...]
    # Gate-major packed weights: [0] -> tanh gate (A / B), [1] -> sigmoid gate
    # (C / D).  Biases are folded in via the constant-1.0 column of hx / hxd.
    A = jnp.tanh(jnp.dot(hx, w_cur_ref[0], preferred_element_type=jnp.float32))
    C = jax.nn.sigmoid(jnp.dot(hx, w_cur_ref[1],
                               preferred_element_type=jnp.float32))
    if dt != 1.0:                       # static specialization of dt
        C = dt * C
    B = jnp.tanh(jnp.dot(hxd, w_del_ref[0], preferred_element_type=jnp.float32))
    D = jax.nn.sigmoid(jnp.dot(hxd, w_del_ref[1],
                               preferred_element_type=jnp.float32))

    h = h_ref[...]
    out_ref[...] = (1.0 - C) * h + C * (beta * A + alpha * D * B)


def pack_taugru_params(params, ninp, nhid, *, mxu_dtype=jnp.bfloat16):
    """Pack the 8 Linear layers into 2 gate-major block matrices.  Call ONCE;
    reuse across timesteps (weight residency).

    Returned w_* have shape (2, Kp, Hp):
      w_cur[0] = [W1 ; U1 ; b1+bu1]   (tanh gate A)   consumed by [h | x | 1]
      w_cur[1] = [W3 ; U3 ; b3+bu3]   (sigmoid gate C)
      w_del[0] = [W2 ; U2 ; b2+bu2]   (tanh gate B)   consumed by [h_d | x_d | 1]
      w_del[1] = [W4 ; U4 ; b4+bu4]   (sigmoid gate D)
    """
    (w1, b1, w2, b2, w3, b3, w4, b4,
     u1, bu1, u2, bu2, u3, bu3, u4, bu4) = params   # PyTorch (out, in) layout

    hp = _round_up(nhid, 128)
    # Pack x into the lane slack of the h block when it fits (smaller K).
    x_off = nhid if (hp - nhid) >= ninp else hp
    bias_idx = x_off + ninp
    kp = _round_up(bias_idx + 1, 128)

    def pack_stream(w_tanh, u_tanh, b_tanh, w_sig, u_sig, b_sig):
        w = jnp.zeros((2, kp, hp), jnp.float32)
        w = w.at[0, :nhid, :nhid].set(w_tanh.T)
        w = w.at[0, x_off:x_off + ninp, :nhid].set(u_tanh.T)
        w = w.at[0, bias_idx, :nhid].set(b_tanh)
        w = w.at[1, :nhid, :nhid].set(w_sig.T)
        w = w.at[1, x_off:x_off + ninp, :nhid].set(u_sig.T)
        w = w.at[1, bias_idx, :nhid].set(b_sig)
        return w.astype(mxu_dtype)

    w_cur = pack_stream(w1, u1, b1 + bu1, w3, u3, b3 + bu3)   # A | C
    w_del = pack_stream(w2, u2, b2 + bu2, w4, u4, b4 + bu4)   # B | D
    layout = dict(ninp=ninp, nhid=nhid, hp=hp, kp=kp, x_off=x_off,
                  bias_idx=bias_idx, mxu_dtype=mxu_dtype)
    return w_cur, w_del, layout


def taugru_cell_forward(x, h, x_delay, h_delay, packed, *, dt, alpha, beta):
    """One tauGRU cell step.  x/x_delay: (B, ninp); h/h_delay: (B, nhid).
    `packed` comes from pack_taugru_params (weights packed once, reused)."""
    w_cur, w_del, layout = packed
    nhid, ninp = layout["nhid"], layout["ninp"]
    hp, kp = layout["hp"], layout["kp"]
    x_off, bias_idx = layout["x_off"], layout["bias_idx"]
    mxu_dtype = layout["mxu_dtype"]

    B = x.shape[0]
    act_bytes = jnp.dtype(mxu_dtype).itemsize
    sublane = 8 if act_bytes >= 4 else (4 // act_bytes) * 8   # bf16 packs 2/sublane
    bp = _round_up(B, sublane)

    def pack_in(hh, xx):
        v = jnp.zeros((bp, kp), jnp.float32)
        v = v.at[:B, :nhid].set(hh)
        v = v.at[:B, x_off:x_off + ninp].set(xx)
        v = v.at[:B, bias_idx].set(1.0)              # bias column
        return v.astype(mxu_dtype)

    hx = pack_in(h, x)
    hxd = pack_in(h_delay, x_delay)
    h_pad = jnp.zeros((bp, hp), jnp.float32).at[:B, :nhid].set(h)

    tn = _pick_tn(hp)
    grid = (hp // tn,)

    kernel = functools.partial(taugru_kernel, dt=float(dt),
                               alpha=float(alpha), beta=float(beta))

    # VMEM budget: resident activations + double-buffered weight/h/out tiles.
    need = (2 * bp * kp * act_bytes
            + 2 * (2 * kp * tn * act_bytes) * 2
            + 2 * (bp * tn * 4) * 2)
    vmem_limit = int(min(max(2 * need, 32 << 20), 48 << 20))

    out = pl.pallas_call(
        kernel,
        out_shape=jax.ShapeDtypeStruct((bp, hp), jnp.float32),
        grid_spec=pltpu.PrefetchScalarGridSpec(
            num_scalar_prefetch=0,
            grid=grid,
            in_specs=[
                pl.BlockSpec((bp, kp), lambda j: (0, 0)),        # hx (resident)
                pl.BlockSpec((bp, kp), lambda j: (0, 0)),        # hxd (resident)
                pl.BlockSpec((2, kp, tn), lambda j: (0, 0, j)),  # w_cur col tile
                pl.BlockSpec((2, kp, tn), lambda j: (0, 0, j)),  # w_del col tile
                pl.BlockSpec((bp, tn), lambda j: (0, j)),        # h col tile
            ],
            out_specs=pl.BlockSpec((bp, tn), lambda j: (0, j)),
        ),
        input_output_aliases={4: 0},   # h_pad -> out (in-place h update)
        compiler_params=pltpu.CompilerParams(
            dimension_semantics=("parallel",),     # shard col tiles across TCs
            vmem_limit_bytes=vmem_limit),
    )(hx, hxd, w_cur, w_del, h_pad)

    return out[:B, :nhid]
    # TODO(synk): for sequence workloads, move the T loop into the kernel
    # (grid axis over T marked "arbitrary", h/h_delay carried in VMEM scratch)
    # so the packed weights are DMA'd once per sequence instead of per step.


def init_params(key, ninp, nhid):
    """Mirror tauGRU_Cell.reset_parameters: all params ~ U(-1/sqrt(nhid), 1/sqrt(nhid)).
    Weights kept in PyTorch (out_features, in_features) layout."""
    std = 1.0 / math.sqrt(nhid)
    ks = jax.random.split(key, 16)
    u = lambda k, shape: jax.random.uniform(k, shape, jnp.float32, -std, std)
    w1, b1 = u(ks[0], (nhid, nhid)), u(ks[1], (nhid,))
    w2, b2 = u(ks[2], (nhid, nhid)), u(ks[3], (nhid,))
    w3, b3 = u(ks[4], (nhid, nhid)), u(ks[5], (nhid,))
    w4, b4 = u(ks[6], (nhid, nhid)), u(ks[7], (nhid,))
    u1, bu1 = u(ks[8], (nhid, ninp)), u(ks[9], (nhid,))
    u2, bu2 = u(ks[10], (nhid, ninp)), u(ks[11], (nhid,))
    u3, bu3 = u(ks[12], (nhid, ninp)), u(ks[13], (nhid,))
    u4, bu4 = u(ks[14], (nhid, ninp)), u(ks[15], (nhid,))
    return (w1, b1, w2, b2, w3, b3, w4, b4,
            u1, bu1, u2, bu2, u3, bu3, u4, bu4)


def taugru_reference(x, h, x_delay, h_delay, params, *, dt, alpha, beta):
    """Plain-JAX reference matching tauGRU_Cell.forward (deterministic branch)."""
    (w1, b1, w2, b2, w3, b3, w4, b4,
     u1, bu1, u2, bu2, u3, bu3, u4, bu4) = params
    lin = lambda v, w, b: v @ w.T + b
    C = dt * jax.nn.sigmoid(lin(h, w3, b3) + lin(x, u3, bu3))
    D = jax.nn.sigmoid(lin(h_delay, w4, b4) + lin(x_delay, u4, bu4))
    A = jnp.tanh(lin(h, w1, b1) + lin(x, u1, bu1))
    Bt = jnp.tanh(lin(h_delay, w2, b2) + lin(x_delay, u2, bu2))
    return (1.0 - C) * h + C * (beta * A + alpha * D * Bt)


if __name__ == "__main__":
    B, NINP, NHID = 2, 4, 32
    DT, ALPHA, BETA = 0.5, 0.75, 1.25

    key = jax.random.PRNGKey(0)
    kx, kh, kxd, khd, kp = jax.random.split(key, 5)
    x = jax.random.normal(kx, (B, NINP), jnp.float32)
    h = jax.random.normal(kh, (B, NHID), jnp.float32)
    x_delay = jax.random.normal(kxd, (B, NINP), jnp.float32)
    h_delay = jax.random.normal(khd, (B, NHID), jnp.float32)
    params = init_params(kp, NINP, NHID)

    ref = taugru_reference(x, h, x_delay, h_delay, params,
                           dt=DT, alpha=ALPHA, beta=BETA)

    # f32 MXU path: tight check against the reference.
    packed_f32 = pack_taugru_params(params, NINP, NHID, mxu_dtype=jnp.float32)
    out_f32 = jax.block_until_ready(
        taugru_cell_forward(x, h, x_delay, h_delay, packed_f32,
                            dt=DT, alpha=ALPHA, beta=BETA))
    assert out_f32.shape == (B, NHID)
    assert jnp.allclose(out_f32, ref, atol=1e-4, rtol=1e-4)

    # Default bf16-weight path (weights packed once, reusable across steps).
    packed_bf16 = pack_taugru_params(params, NINP, NHID)   # mxu_dtype=bf16
    out_bf16 = jax.block_until_ready(
        taugru_cell_forward(x, h, x_delay, h_delay, packed_bf16,
                            dt=DT, alpha=ALPHA, beta=BETA))
    assert out_bf16.shape == (B, NHID)
    assert jnp.allclose(out_bf16, ref, atol=5e-2, rtol=5e-2)

    print("KERNEL_OK")
</pallas_src>

<mosaic_0001>
module attributes {stable_mosaic.version = 11 : i64} {
  func.func @taugru_kernel(%arg0: i32, %arg1: memref<8x128xf32, #tpu.memory_space<vmem>>, %arg2: memref<8x128xf32, #tpu.memory_space<vmem>>, %arg3: memref<2x128x128xf32, #tpu.memory_space<vmem>>, %arg4: memref<2x128x128xf32, #tpu.memory_space<vmem>>, %arg5: memref<8x128xf32, #tpu.memory_space<vmem>>, %arg6: memref<8x128xf32, #tpu.memory_space<vmem>>) attributes {dimension_semantics = [#tpu.dimension_semantics<parallel>], iteration_bounds = array<i64: 1>, scalar_prefetch = 0 : i64, scratch_operands = 0 : i64, tpu.core_type = #tpu.core_type<tc>, window_params = [{pipeline_mode = #tpu.pipeline_mode<synchronous>, transform_indices = @transform_0, window_bounds = array<i64: 8, 128>}, {pipeline_mode = #tpu.pipeline_mode<synchronous>, transform_indices = @transform_1, window_bounds = array<i64: 8, 128>}, {transform_indices = @transform_2, window_bounds = array<i64: 2, 128, 128>}, {transform_indices = @transform_3, window_bounds = array<i64: 2, 128, 128>}, {transform_indices = @transform_4, window_bounds = array<i64: 8, 128>}, {transform_indices = @transform_5, window_bounds = array<i64: 8, 128>}]} {
    %c0 = arith.constant 0 : index
    %c0_0 = arith.constant 0 : index
    %0 = vector.load %arg1[%c0, %c0_0] : memref<8x128xf32, #tpu.memory_space<vmem>>, vector<8x128xf32>
    %c0_1 = arith.constant 0 : index
    %c0_2 = arith.constant 0 : index
    %1 = vector.load %arg2[%c0_1, %c0_2] : memref<8x128xf32, #tpu.memory_space<vmem>>, vector<8x128xf32>
    %c0_3 = arith.constant 0 : index
    %c0_4 = arith.constant 0 : index
    %c0_5 = arith.constant 0 : index
    %2 = vector.load %arg3[%c0_3, %c0_4, %c0_5] : memref<2x128x128xf32, #tpu.memory_space<vmem>>, vector<1x128x128xf32>
    %3 = vector.shape_cast %2 : vector<1x128x128xf32> to vector<128x128xf32>
    %cst = arith.constant dense<0.000000e+00> : vector<8x128xf32>
    %4 = tpu.matmul %0, %3, %cst {dimension_numbers = #tpu.dot_dimension_numbers<[1], [0], [0], [1], [0, 0, 1, 1], [], []>} : vector<8x128xf32>, vector<128x128xf32>, vector<8x128xf32> -> vector<8x128xf32>
    %5 = math.tanh %4 : vector<8x128xf32>
    %c1 = arith.constant 1 : index
    %c0_6 = arith.constant 0 : index
    %c0_7 = arith.constant 0 : index
    %6 = vector.load %arg3[%c1, %c0_6, %c0_7] : memref<2x128x128xf32, #tpu.memory_space<vmem>>, vector<1x128x128xf32>
    %7 = vector.shape_cast %6 : vector<1x128x128xf32> to vector<128x128xf32>
    %cst_8 = arith.constant dense<0.000000e+00> : vector<8x128xf32>
    %8 = tpu.matmul %0, %7, %cst_8 {dimension_numbers = #tpu.dot_dimension_numbers<[1], [0], [0], [1], [0, 0, 1, 1], [], []>} : vector<8x128xf32>, vector<128x128xf32>, vector<8x128xf32> -> vector<8x128xf32>
    %9 = arith.negf %8 : vector<8x128xf32>
    %10 = math.exp %9 : vector<8x128xf32>
    %cst_9 = arith.constant 1.000000e+00 : f32
    %11 = vector.broadcast %cst_9 : f32 to vector<8x128xf32>
    %12 = arith.addf %11, %10 : vector<8x128xf32>
    %13 = arith.divf %11, %12 : vector<8x128xf32>
    %cst_10 = arith.constant 5.000000e-01 : f32
    %14 = vector.broadcast %cst_10 : f32 to vector<8x128xf32>
    %15 = arith.mulf %14, %13 : vector<8x128xf32>
    %c0_11 = arith.constant 0 : index
    %c0_12 = arith.constant 0 : index
    %c0_13 = arith.constant 0 : index
    %16 = vector.load %arg4[%c0_11, %c0_12, %c0_13] : memref<2x128x128xf32, #tpu.memory_space<vmem>>, vector<1x128x128xf32>
    %17 = vector.shape_cast %16 : vector<1x128x128xf32> to vector<128x128xf32>
    %cst_14 = arith.constant dense<0.000000e+00> : vector<8x128xf32>
    %18 = tpu.matmul %1, %17, %cst_14 {dimension_numbers = #tpu.dot_dimension_numbers<[1], [0], [0], [1], [0, 0, 1, 1], [], []>} : vector<8x128xf32>, vector<128x128xf32>, vector<8x128xf32> -> vector<8x128xf32>
    %19 = math.tanh %18 : vector<8x128xf32>
    %c1_15 = arith.constant 1 : index
    %c0_16 = arith.constant 0 : index
    %c0_17 = arith.constant 0 : index
    %20 = vector.load %arg4[%c1_15, %c0_16, %c0_17] : memref<2x128x128xf32, #tpu.memory_space<vmem>>, vector<1x128x128xf32>
    %21 = vector.shape_cast %20 : vector<1x128x128xf32> to vector<128x128xf32>
    %cst_18 = arith.constant dense<0.000000e+00> : vector<8x128xf32>
    %22 = tpu.matmul %1, %21, %cst_18 {dimension_numbers = #tpu.dot_dimension_numbers<[1], [0], [0], [1], [0, 0, 1, 1], [], []>} : vector<8x128xf32>, vector<128x128xf32>, vector<8x128xf32> -> vector<8x128xf32>
    %23 = arith.negf %22 : vector<8x128xf32>
    %24 = math.exp %23 : vector<8x128xf32>
    %cst_19 = arith.constant 1.000000e+00 : f32
    %25 = vector.broadcast %cst_19 : f32 to vector<8x128xf32>
    %26 = arith.addf %25, %24 : vector<8x128xf32>
    %27 = arith.divf %25, %26 : vector<8x128xf32>
    %c0_20 = arith.constant 0 : index
    %c0_21 = arith.constant 0 : index
    %28 = vector.load %arg5[%c0_20, %c0_21] : memref<8x128xf32, #tpu.memory_space<vmem>>, vector<8x128xf32>
    %cst_22 = arith.constant 1.000000e+00 : f32
    %29 = vector.broadcast %cst_22 : f32 to vector<8x128xf32>
    %30 = arith.subf %29, %15 : vector<8x128xf32>
    %31 = arith.mulf %30, %28 : vector<8x128xf32>
    %cst_23 = arith.constant 1.250000e+00 : f32
    %32 = vector.broadcast %cst_23 : f32 to vector<8x128xf32>
    %33 = arith.mulf %32, %5 : vector<8x128xf32>
    %cst_24 = arith.constant 7.500000e-01 : f32
    %34 = vector.broadcast %cst_24 : f32 to vector<8x128xf32>
    %35 = arith.mulf %34, %27 : vector<8x128xf32>
    %36 = arith.mulf %35, %19 : vector<8x128xf32>
    %37 = arith.addf %33, %36 : vector<8x128xf32>
    %38 = arith.mulf %15, %37 : vector<8x128xf32>
    %39 = arith.addf %31, %38 : vector<8x128xf32>
    %c0_25 = arith.constant 0 : index
    %c0_26 = arith.constant 0 : index
    %40 = vector.load %arg6[%c0_25, %c0_26] : memref<8x128xf32, #tpu.memory_space<vmem>>, vector<8x128xf32>
    tpu.vector_store %arg6[%c0_25, %c0_26], %39 {strides = array<i32>} : memref<8x128xf32, #tpu.memory_space<vmem>>, vector<8x128xf32>,
    return
  }
  func.func @transform_0(%arg0: i32) -> (i32, i32) {
    %c0_i32 = arith.constant 0 : i32
    %c0_i32_0 = arith.constant 0 : i32
    %c0_i32_1 = arith.constant 0 : i32
    return %c0_i32, %c0_i32_0 : i32, i32
  }
  func.func @transform_1(%arg0: i32) -> (i32, i32) {
    %c0_i32 = arith.constant 0 : i32
    %c0_i32_0 = arith.constant 0 : i32
    %c0_i32_1 = arith.constant 0 : i32
    return %c0_i32, %c0_i32_0 : i32, i32
  }
  func.func @transform_2(%arg0: i32) -> (i32, i32, i32) {
    %c0_i32 = arith.constant 0 : i32
    %c0_i32_0 = arith.constant 0 : i32
    %c0_i32_1 = arith.constant 0 : i32
    return %c0_i32, %c0_i32_0, %arg0 : i32, i32, i32
  }
  func.func @transform_3(%arg0: i32) -> (i32, i32, i32) {
    %c0_i32 = arith.constant 0 : i32
    %c0_i32_0 = arith.constant 0 : i32
    %c0_i32_1 = arith.constant 0 : i32
    return %c0_i32, %c0_i32_0, %arg0 : i32, i32, i32
  }
  func.func @transform_4(%arg0: i32) -> (i32, i32) {
    %c0_i32 = arith.constant 0 : i32
    %c0_i32_0 = arith.constant 0 : i32
    return %c0_i32, %arg0 : i32, i32
  }
  func.func @transform_5(%arg0: i32) -> (i32, i32) {
    %c0_i32 = arith.constant 0 : i32
    %c0_i32_0 = arith.constant 0 : i32
    return %c0_i32, %arg0 : i32, i32
  }
}

</mosaic_0001>

<bundles_post_ra>
// kernel: tpu_custom_call.1
= control target key start
LH: loop header
LB: loop body
LE: loop exit
PB: predicated region body
PF: predicated region fallthrough
CT: control target
= control target key end

     0   :  { %10 = vsyncpa [#allocation3], 0  ;;  %s459_s0 = inlined_call_operand.vmem [shape: f32[8,128], index: 0, kind: input, shape index: {}]   ;;  %s460_s1 = inlined_call_operand.vmem [shape: f32[8,128], index: 1, kind: input, shape index: {}]   ;;  %s461_s2 = inlined_call_operand.hbm [shape: f32[2,128,128], index: 2, kind: input, shape index: {}]   ;;  %s462_s3 = inlined_call_operand.hbm [shape: f32[2,128,128], index: 3, kind: input, shape index: {}]   ;;  %s463_s4 = inlined_call_operand.hbm [shape: f32[8,128], index: 4, kind: input, shape index: {}, may-alias: {4,5}]   ;;  %s464_s5 = inlined_call_operand.hbm [shape: f32[8,128], index: 5, kind: output, shape index: {}, may-alias: {4,5}]  }
   0x1   :  { %11 = vsyncpa [#allocation6], 0 }
   0x2   :  { %12 = vsyncpa [#allocation4], 0  ;;  %s34_s20 = sshll.u32 %s462_s3, 4  ;;  %s405_s21 = smov [#allocation5]   ;;  %s35_s20 = int_to_ptr.hbm [resolvable:$true] %s34_s20 }
   0x3   :  { %s36_s22 = sshll.u32 %s405_s21, 4  ;;  %s21_s25 = sshll.u32 %s461_s2, 4  ;;  %s37_s22 = int_to_ptr.vmem [resolvable:$true] %s36_s22  ;;  %s22_s25 = int_to_ptr.hbm [resolvable:$true] %s21_s25 }
   0x4   :  { %s406_s26 = smov 128   ;;  %s407_s27 = smov 8  }
   0x5   :  { %42 = dma.hbm_to_vmem [thread:$0]  %s35_s20, 4096, %s37_s22, [#allocation6], %s406_s26, %s406_s26, %s407_s27  }
   0x6   :  { %s408_s28 = smov [#allocation2]   ;;  %s48_s7 = sshll.u32 %s463_s4, 4  ;;  %s49_s7 = int_to_ptr.hbm [resolvable:$true] %s48_s7 }
   0x7   :  { %s23_s29 = sshll.u32 %s408_s28, 4  ;;  %s409_s3 = smov [#allocation7]   ;;  %s24_s29 = int_to_ptr.vmem [resolvable:$true] %s23_s29 }
   0x8   :  { %29 = dma.hbm_to_vmem [thread:$0]  %s22_s25, 4096, %s24_s29, [#allocation3], %s406_s26, %s406_s26, %s407_s27  }
   0x9   :  { %s50_s8 = sshll.u32 %s409_s3, 4  ;;  %s51_s8 = int_to_ptr.vmem [resolvable:$true] %s50_s8 }
   0xa   :  { %53 = dma.hbm_to_vmem [thread:$0]  %s49_s7, 128, %s51_s8, [#allocation6]  }
   0xb   :  { %399 = dma.done.wait [#allocation3], 4096  }
   0xc   :  { %400 = vsyncadd [#allocation3], 4294963200 }
   0xd   :  { %401 = dma.done.wait [#allocation6], 4224  }
   0xe   :  { %402 = vsyncadd [#allocation6], 4294963072  ;;  %v121_v0 = vld [vmem:[#allocation2 + $0xf8] sm:$0xff]  ;;  %v120_v2 = vld [vmem:[#allocation2 + $0xf0] sm:$0xff]  ;;  %s272_s13 = sshll.u32 %s464_s5, 4  ;;  %s273_s13 = int_to_ptr.hbm [resolvable:$true] %s272_s13 }
   0xf   :  { %v215_v1 = vld [vmem:[#allocation5 + $0xf8] sm:$0xff]  ;;  %122 = vmatpush.msra.mxu1 %v121_v0  ;;  %v214_v3 = vld [vmem:[#allocation5 + $0xf0] sm:$0xff]  ;;  %v119_v4 = vld [vmem:[#allocation2 + $0xe8] sm:$0xff] }
  0x10   :  { %216 = vmatpush.msra.mxu3 %v215_v1  ;;  %v213_v5 = vld [vmem:[#allocation5 + $0xe8] sm:$0xff]  ;;  %v118_v6 = vld [vmem:[#allocation2 + $0xe0] sm:$0xff]  ;;  %v117_v8 = vld [vmem:[#allocation2 + $0xd8] sm:$0xff] }
  0x11   :  { %123 = vmatpush.msra.mxu1 %v120_v2  ;;  %v212_v7 = vld [vmem:[#allocation5 + $0xe0] sm:$0xff]  ;;  %v211_v9 = vld [vmem:[#allocation5 + $0xd8] sm:$0xff]  ;;  %v116_v10 = vld [vmem:[#allocation2 + $0xd0] sm:$0xff] }
  0x12   :  { %217 = vmatpush.msra.mxu3 %v214_v3  ;;  %v210_v11 = vld [vmem:[#allocation5 + $0xd0] sm:$0xff]  ;;  %v177_v12 = vld [vmem:[#allocation5 + $0x78] sm:$0xff]  ;;  %v115_v14 = vld [vmem:[#allocation2 + $0xc8] sm:$0xff] }
  0x13   :  { %124 = vmatpush.msra.mxu1 %v119_v4  ;;  %v176_v13 = vld [vmem:[#allocation5 + $0x70] sm:$0xff]  ;;  %v209_v15 = vld [vmem:[#allocation5 + $0xc8] sm:$0xff]  ;;  %178 = vmatpush.msra.mxu2 %v177_v12  ;;  %v83_v17 = vld [vmem:[#allocation2 + $0x78] sm:$0xff] }
  0x14   :  { %218 = vmatpush.msra.mxu3 %v213_v5  ;;  %v175_v16 = vld [vmem:[#allocation5 + $0x68] sm:$0xff]  ;;  %v114_v18 = vld [vmem:[#allocation2 + $0xc0] sm:$0xff]  ;;  %84 = vmatpush.msra.mxu0 %v83_v17  ;;  %v82_v20 = vld [vmem:[#allocation2 + $0x70] sm:$0xff] }
  0x15   :  { %125 = vmatpush.msra.mxu1 %v118_v6  ;;  %v208_v19 = vld [vmem:[#allocation5 + $0xc0] sm:$0xff]  ;;  %179 = vmatpush.msra.mxu2 %v176_v13  ;;  %v81_v22 = vld [vmem:[#allocation2 + $0x68] sm:$0xff]  ;;  %v113_v23 = vld [vmem:[#allocation2 + $0xb8] sm:$0xff] }
  0x16   :  { %219 = vmatpush.msra.mxu3 %v212_v7  ;;  %v174_v21 = vld [vmem:[#allocation5 + $0x60] sm:$0xff]  ;;  %v207_v24 = vld [vmem:[#allocation5 + $0xb8] sm:$0xff]  ;;  %85 = vmatpush.msra.mxu0 %v82_v20  ;;  %v112_v27 = vld [vmem:[#allocation2 + $0xb0] sm:$0xff] }
  0x17   :  { %126 = vmatpush.msra.mxu1 %v117_v8  ;;  %180 = vmatpush.msra.mxu2 %v175_v16  ;;  %v173_v25 = vld [vmem:[#allocation5 + $0x58] sm:$0xff]  ;;  %v80_v26 = vld [vmem:[#allocation2 + $0x60] sm:$0xff]  ;;  %v206_v28 = vld [vmem:[#allocation5 + $0xb0] sm:$0xff] }
  0x18   :  { %220 = vmatpush.msra.mxu3 %v211_v9  ;;  %86 = vmatpush.msra.mxu0 %v81_v22  ;;  %v172_v29 = vld [vmem:[#allocation5 + $0x50] sm:$0xff]  ;;  %v79_v30 = vld [vmem:[#allocation2 + $0x58] sm:$0xff]  ;;  %v111_v31 = vld [vmem:[#allocation2 + $0xa8] sm:$0xff] }
  0x19   :  { %127 = vmatpush.msra.mxu1 %v116_v10  ;;  %181 = vmatpush.msra.mxu2 %v174_v21  ;;  %v205_v32 = vld [vmem:[#allocation5 + $0xa8] sm:$0xff]  ;;  %v78_v34 = vld [vmem:[#allocation2 + $0x50] sm:$0xff]  ;;  %v110_v35 = vld [vmem:[#allocation2 + $0xa0] sm:$0xff] }
  0x1a   :  { %221 = vmatpush.msra.mxu3 %v210_v11  ;;  %87 = vmatpush.msra.mxu0 %v80_v26  ;;  %v171_v33 = vld [vmem:[#allocation5 + $0x48] sm:$0xff]  ;;  %v204_v36 = vld [vmem:[#allocation5 + $0xa0] sm:$0xff]  ;;  %v109_v39 = vld [vmem:[#allocation2 + $0x98] sm:$0xff] }
  0x1b   :  { %128 = vmatpush.msra.mxu1 %v115_v14  ;;  %182 = vmatpush.msra.mxu2 %v173_v25  ;;  %v170_v37 = vld [vmem:[#allocation5 + $0x40] sm:$0xff]  ;;  %v77_v38 = vld [vmem:[#allocation2 + $0x48] sm:$0xff]  ;;  %v203_v40 = vld [vmem:[#allocation5 + $0x98] sm:$0xff] }
  0x1c   :  { %222 = vmatpush.msra.mxu3 %v209_v15  ;;  %88 = vmatpush.msra.mxu0 %v79_v30  ;;  %v169_v41 = vld [vmem:[#allocation5 + $0x38] sm:$0xff]  ;;  %v76_v42 = vld [vmem:[#allocation2 + $0x40] sm:$0xff]  ;;  %v108_v43 = vld [vmem:[#allocation2 + $0x90] sm:$0xff] }
  0x1d   :  { %129 = vmatpush.msra.mxu1 %v114_v18  ;;  %183 = vmatpush.msra.mxu2 %v172_v29  ;;  %v202_v44 = vld [vmem:[#allocation5 + $0x90] sm:$0xff]  ;;  %v75_v46 = vld [vmem:[#allocation2 + $0x38] sm:$0xff]  ;;  %v107_v47 = vld [vmem:[#allocation2 + $0x88] sm:$0xff] }
  0x1e   :  { %223 = vmatpush.msra.mxu3 %v208_v19  ;;  %89 = vmatpush.msra.mxu0 %v78_v34  ;;  %v168_v45 = vld [vmem:[#allocation5 + $0x30] sm:$0xff]  ;;  %v201_v48 = vld [vmem:[#allocation5 + $0x88] sm:$0xff]  ;;  %v106_v51 = vld [vmem:[#allocation2 + $0x80] sm:$0xff] }
  0x1f   :  { %130 = vmatpush.msra.mxu1 %v113_v23  ;;  %184 = vmatpush.msra.mxu2 %v171_v33  ;;  %v167_v49 = vld [vmem:[#allocation5 + $0x28] sm:$0xff]  ;;  %v74_v50 = vld [vmem:[#allocation2 + $0x30] sm:$0xff]  ;;  %v200_v52 = vld [vmem:[#allocation5 + $0x80] sm:$0xff] }
  0x20   :  { %224 = vmatpush.msra.mxu3 %v207_v24  ;;  %90 = vmatpush.msra.mxu0 %v77_v38  ;;  %v66_v53 = vld [vmem:[%s459_s0] sm:$0xff]  ;;  %v73_v56 = vld [vmem:[#allocation2 + $0x28] sm:$0xff]  ;;  %v165_v57 = vld [vmem:[#allocation5 + $0x18] sm:$0xff]  ;;  %s410_s0 = smov [#allocation8]  }
  0x21   :  { %131 = vmatpush.msra.mxu1 %v112_v27  ;;  %185 = vmatpush.msra.mxu2 %v170_v37  ;;  %v67_v54 = vld [vmem:[%s460_s1] sm:$0xff]  ;;  %v164_v59 = vld [vmem:[#allocation5 + $0x10] sm:$0xff]  ;;  %v71_v60 = vld [vmem:[#allocation2 + $0x18] sm:$0xff]  ;;  %s270_s1 = sshll.u32 %s410_s0, 4  ;;  %s271_s1 = int_to_ptr.vmem [resolvable:$true] %s270_s1 }
  0x22   :  { %225 = vmatpush.msra.mxu3 %v206_v28  ;;  %91 = vmatpush.msra.mxu0 %v76_v42  ;;  %v166_v55 = vld [vmem:[#allocation5 + $0x20] sm:$0xff]  ;;  %v163_v61 = vld [vmem:[#allocation5 + $0x8] sm:$0xff]  ;;  %v70_v62 = vld [vmem:[#allocation2 + $0x10] sm:$0xff] }
  0x23   :  { %132 = vmatpush.msra.mxu1 %v111_v31  ;;  %186 = vmatpush.msra.mxu2 %v169_v41  ;;  %v72_v58 = vld [vmem:[#allocation2 + $0x20] sm:$0xff]  ;;  %v69_v0 = vld [vmem:[#allocation2 + $0x8] sm:$0xff] }
  0x24   :  { %226 = vmatpush.msra.mxu3 %v205_v32  ;;  %92 = vmatpush.msra.mxu0 %v75_v46  ;;  %v162_v63 = vld [vmem:[#allocation5] sm:$0xff] }
  0x25   :  { %133 = vmatpush.msra.mxu1 %v110_v35  ;;  %187 = vmatpush.msra.mxu2 %v168_v45  ;;  %v68_v1 = vld [vmem:[#allocation2] sm:$0xff] }
  0x26   :  { %227 = vmatpush.msra.mxu3 %v204_v36  ;;  %93 = vmatpush.msra.mxu0 %v74_v50 }
  0x27   :  { %134 = vmatpush.msra.mxu1 %v109_v39  ;;  %188 = vmatpush.msra.mxu2 %v167_v49  ;;  %v255_v39 = vld [vmem:[#allocation7] sm:$0xff] }
  0x28   :  { %228 = vmatpush.msra.mxu3 %v203_v40  ;;  %94 = vmatpush.msra.mxu0 %v73_v56 }
  0x29   :  { %135 = vmatpush.msra.mxu1 %v108_v43  ;;  %189 = vmatpush.msra.mxu2 %v166_v55 }
  0x2a   :  { %229 = vmatpush.msra.mxu3 %v202_v44  ;;  %95 = vmatpush.msra.mxu0 %v72_v58 }
  0x2b   :  { %136 = vmatpush.msra.mxu1 %v107_v47  ;;  %190 = vmatpush.msra.mxu2 %v165_v57 }
  0x2c   :  { %230 = vmatpush.msra.mxu3 %v201_v48  ;;  %96 = vmatpush.msra.mxu0 %v71_v60 }
  0x2d   :  { %137 = vmatpush.msra.mxu1 %v106_v51  ;;  %191 = vmatpush.msra.mxu2 %v164_v59 }
  0x2e   :  { %231 = vmatpush.msra.mxu3 %v200_v52  ;;  %138 = vmatmul.f32.vlgmr.msra.gmra.mxu1 %v66_v53 }
  0x2f   :  { %232 = vmatmul.f32.vlgmr.msra.gmra.mxu3 %v67_v54  ;;  %192 = vmatpush.msra.mxu2 %v163_v61 }
  0x30   :  { %97 = vmatpush.msra.mxu0 %v70_v62 }
  0x31   :  { %193 = vmatpush.msra.mxu2 %v162_v63 }
  0x32   :  { %98 = vmatpush.msra.mxu0 %v69_v0  ;;  %194 = vmatmul.f32.vlgmr.msra.gmra.mxu2 %v67_v54 }
  0x34   :  { %99 = vmatpush.msra.mxu0 %v68_v1 }
  0x35   :  { %100 = vmatmul.f32.vlgmr.msra.gmra.mxu0 %v66_v53 }
  0xab   :  { %v139_v2 = vpop.f32.mrf.mxu1 }
  0xac   :  { %v283_v3 = vmul.f32 -1.442695, %v139_v2 }
  0xae   :  { %291 = vpow2.f32 %v283_v3 }
  0xb2   :  { %v233_v4 = vpop.f32.mrf.mxu3  ;;  %v101_v14 = vpop.f32.mrf.mxu0 }
  0xb3   :  { %v284_v5 = vmul.f32 -1.442695, %v233_v4 }
  0xb4   :  { %v292_v6 = vpop.eup %291 }
  0xb5   :  { %293 = vpow2.f32 %v284_v5  ;;  %v145_v7 = vadd.f32 1.0, %v292_v6  ;;  %v195_v18 = vpop.f32.mrf.mxu2 }
  0xb7   :  { %295 = vrcp.f32 %v145_v7  ;;  %vm151_vm0 = vweird.f32 %v145_v7  ;;  %v157_v16 = vand.u32 2147483648, %v145_v7  ;;  %v155_v20 = vand.u32 2147483647, %v145_v7 }
  0xb9   :  { %v158_v24 = vor.u32 1.1754944e-38, %v157_v16  ;;  %vm156_vm4 = vcmp.eq.f32.partialorder %v155_v20, 8.507059e+37 }
  0xbb   :  { %v294_v8 = vpop.eup %293 }
  0xbc   :  { %v239_v9 = vadd.f32 1.0, %v294_v8 }
  0xbd   :  { %v296_v10 = vpop.eup %295 }
  0xbe   :  { %297 = vrcp.f32 %v239_v9  ;;  %v147_v11 = vmul.f32 %v296_v10, %v145_v7  ;;  %vm152_vm1 = vweird.f32 %v296_v10  ;;  %v251_v23 = vand.u32 2147483648, %v239_v9 }
  0xbf   :  { %299 = vtanh.f32 %v101_v14  ;;  %vm153_vm2 = vmor %vm151_vm0, %vm152_vm1  ;;  %v249_v26 = vand.u32 2147483647, %v239_v9  ;;  %vm245_vm5 = vweird.f32 %v239_v9 }
  0xc0   :  { %v148_v12 = vsub.f32 1.0, %v147_v11  ;;  %301 = vtanh.f32 %v195_v18  ;;  %v252_v30 = vor.u32 1.1754944e-38, %v251_v23 }
  0xc1   :  { %vm250_vm7 = vcmp.eq.f32.partialorder %v249_v26, 8.507059e+37 }
  0xc2   :  { %v149_v13 = vmul.f32 %v296_v10, %v148_v12 }
  0xc4   :  { %v298_v15 = vpop.eup %297  ;;  %v150_v19 = vadd.f32 %v296_v10, %v149_v13 }
  0xc5   :  { %v241_v17 = vmul.f32 %v298_v15, %v239_v9  ;;  %vm246_vm3 = vweird.f32 %v298_v15  ;;  %v300_v29 = vpop.eup %299 }
  0xc6   :  { %v154_v22 = vsel %vm153_vm2, %v296_v10, %v150_v19  ;;  %vm247_vm6 = vmor %vm245_vm5, %vm246_vm3  ;;  %v302_v33 = vpop.eup %301  ;;  %v258_v35 = vmul.f32 1.25, %v300_v29 }
  0xc7   :  { %v242_v21 = vsub.f32 1.0, %v241_v17  ;;  %v159_v27 = vsel %vm156_vm4, %v158_v24, %v154_v22 }
  0xc8   :  { %v161_v32 = vmul.f32 0.5, %v159_v27 }
  0xc9   :  { %v243_v25 = vmul.f32 %v298_v15, %v242_v21 }
  0xca   :  { %v256_v38 = vsub.f32 1.0, %v161_v32 }
  0xcb   :  { %v244_v28 = vadd.f32 %v298_v15, %v243_v25 }
  0xcc   :  { %v257_v41 = vmul.f32 %v256_v38, %v255_v39 }
  0xcd   :  { %v248_v31 = vsel %vm247_vm6, %v298_v15, %v244_v28 }
  0xce   :  { %v253_v34 = vsel %vm250_vm7, %v252_v30, %v248_v31 }
  0xcf   :  { %v259_v36 = vmul.f32 0.75, %v253_v34 }
  0xd1   :  { %v260_v37 = vmul.f32 %v302_v33, %v259_v36 }
  0xd3   :  { %v261_v40 = vadd.f32 %v260_v37, %v258_v35 }
  0xd5   :  { %v262_v42 = vmul.f32 %v261_v40, %v161_v32 }
  0xd7   :  { %v263_v43 = vadd.f32 %v262_v42, %v257_v41 }
  0xd9   :  { %264 = vst [vmem:[#allocation8] sm:$0xff] %v263_v43 }
  0xda   :  { %275 = dma.vmem_to_hbm [thread:$0]  %s271_s1, 128, %s273_s13, [#allocation4]  }
  0xdb   :  { %403 = dma.done.wait [#allocation4], 128  }
  0xdc   :  { %404 = vsyncadd [#allocation4], 4294967168 }
  0xdd   :  { %280 = vsyncpa [#allocation3], 1 }
  0xde   :  { %281 = vsyncpa [#allocation6], 1 }
  0xdf   :  { %282 = vsyncpa [#allocation4], 1 }

</bundles_post_ra>
